<compile_context>
chip_gen: v7x
topology: tpu7x:2x2x1
jax: 0.10.0
libtpu: 0.0.40
codegen_flags: <defaults>
</compile_context>

<pallas_src>
import math

import jax
import jax.numpy as jnp
from jax import lax
from jax.experimental import pallas as pl
from jax.experimental.pallas import tpu as pltpu

_LANE = 128
_TARGET_BLOCK_BYTES = 8 * 1024 * 1024    # per (nb, tile) input block
_VMEM_LIMIT_BYTES = 48 * 1024 * 1024     # explicit; fits v7x's 64 MiB physical


def _round_up(a: int, b: int) -> int:
    return (a + b - 1) // b * b


def _sublane_pack(dtype) -> int:
    # Sub-32-bit dtypes pack along sublanes: 8 rows f32, 16 bf16, 32 int8/fp8.
    return 8 * max(1, 4 // jnp.dtype(dtype).itemsize)


def _min_value(dtype):
    dtype = jnp.dtype(dtype)
    if dtype == jnp.bool_:
        return False
    if jnp.issubdtype(dtype, jnp.floating):
        return -jnp.inf
    return jnp.iinfo(dtype).min


def _choose_blocks(n: int, m: int, itemsize: int, pack: int):
    """Pick (nb, tile) for the (nb, tile) input blocks of the flattened (n, m) array."""
    target = _TARGET_BLOCK_BYTES
    # Widest lane-aligned tile such that one sublane-pack of rows fits the budget.
    tile_cap = max(_LANE, (target // (pack * itemsize)) // _LANE * _LANE)
    if m <= tile_cap:
        tile = m          # full rows -> every input DMA is contiguous in HBM
        # v7x has 2 TensorCores: give the "parallel" feature axis >= 2 tiles
        # when there is enough data for the split to matter.
        if m >= 2 * _LANE and n * m * itemsize >= 4 * target:
            tile = _round_up((m + 1) // 2, _LANE)
    else:
        tile = tile_cap   # split the feature axis at 128-lane multiples

    # Rows per block: grow nb to fill the byte budget, aligned to sublane packing.
    if n <= pack:
        nb = n
    else:
        nb = max(pack, (target // (tile * itemsize)) // pack * pack)
        nb = min(nb, (n // pack) * pack)
    return nb, tile


def _make_kernel(n: int, nb: int, groups: int, acc_rows: int, ragged: bool, min_val):
    def kernel(x_ref, o_ref, acc_ref):
        k = pl.program_id(1)

        @pl.when(k == 0)
        def _init():
            acc_ref[...] = jnp.full(acc_ref.shape, min_val, acc_ref.dtype)

        slab = x_ref[...]                                    # (nb, tile)
        if ragged:
            # Mask the N-overhang rows of the (Pallas-padded) last block.
            row = k * nb + lax.broadcasted_iota(jnp.int32, slab.shape, 0)
            slab = jnp.where(row < n, slab, jnp.asarray(min_val, slab.dtype))

        if groups > 1:
            # Fold nb rows down to one sublane pack: elementwise max across
            # vregs (major-axis reduce) -> no XLU work in the hot loop.
            slab = jnp.max(slab.reshape(groups, acc_rows, slab.shape[-1]), axis=0)
        acc_ref[...] = jnp.maximum(acc_ref[...], slab)

        @pl.when(k == pl.num_programs(1) - 1)
        def _finalize():
            # Single cross-sublane reduce + lane-dense store per feature tile.
            o_ref[...] = jnp.max(acc_ref[...], axis=0, keepdims=True)

    return kernel


def max_pool(x):
    """Max over axis 0 of x, i.e. torch's x.max(0)[0]."""
    n = x.shape[0]
    if n == 0:
        raise ValueError("max_pool: reduction over an empty axis is undefined")
    rest = x.shape[1:]
    m = math.prod(rest) if rest else 1
    if m == 0:
        # Empty feature axis: nothing to reduce, result is an empty array.
        return jnp.zeros(rest, x.dtype)

    xf = x.reshape(n, m)
    itemsize = jnp.dtype(x.dtype).itemsize
    pack = _sublane_pack(x.dtype)

    nb, tile = _choose_blocks(n, m, itemsize, pack)
    if nb > pack:                            # nb is a multiple of pack here
        groups, acc_rows = nb // pack, pack
    else:
        groups, acc_rows = 1, nb
    ragged = (n % nb) != 0
    min_val = _min_value(x.dtype)

    grid = (pl.cdiv(m, tile), pl.cdiv(n, nb))   # feature tiles first, N reduction last

    out = pl.pallas_call(
        _make_kernel(n, nb, groups, acc_rows, ragged, min_val),
        out_shape=jax.ShapeDtypeStruct((1, m), x.dtype),
        grid=grid,
        in_specs=[pl.BlockSpec((nb, tile), lambda t, k: (k, t))],
        out_specs=pl.BlockSpec((1, tile), lambda t, k: (0, t)),
        scratch_shapes=[pltpu.VMEM((acc_rows, tile), x.dtype)],
        compiler_params=pltpu.CompilerParams(
            dimension_semantics=("parallel", "arbitrary"),
            vmem_limit_bytes=_VMEM_LIMIT_BYTES,
        ),
        cost_estimate=pl.CostEstimate(
            flops=n * m,
            transcendentals=0,
            bytes_accessed=n * m * itemsize + m * itemsize,
        ),
    )(xf)

    return out[0].reshape(rest)


if __name__ == "__main__":
    key = jax.random.PRNGKey(0)

    # Shape implied by the module: stack of feature maps, max over the stack.
    x = jax.random.normal(key, (2, 4, 16, 16), dtype=jnp.float32)
    out = jax.block_until_ready(max_pool(x))
    ref = jnp.max(x, axis=0)
    assert out.shape == ref.shape, (out.shape, ref.shape)
    assert out.dtype == ref.dtype, (out.dtype, ref.dtype)
    assert bool(jnp.allclose(out, ref)), "mismatch vs jnp.max reference"

    # Also exercise the ragged-N (in-kernel mask, multi-step reduction) path.
    x2 = jax.random.normal(jax.random.PRNGKey(1), (10, 4, 16, 16), dtype=jnp.float32)
    out2 = jax.block_until_ready(max_pool(x2))
    assert bool(jnp.allclose(out2, jnp.max(x2, axis=0))), "ragged-N mismatch"

    print("KERNEL_OK")
</pallas_src>

<mosaic_0001>
module attributes {stable_mosaic.version = 11 : i64} {
  func.func @kernel(%arg0: i32, %arg1: i32, %arg2: memref<2x1024xf32, #tpu.memory_space<vmem>>, %arg3: memref<1x1024xf32, #tpu.memory_space<vmem>>, %arg4: memref<2x1024xf32, #tpu.memory_space<vmem>>) attributes {dimension_semantics = [#tpu.dimension_semantics<parallel>, #tpu.dimension_semantics<arbitrary>], iteration_bounds = array<i64: 1, 1>, scalar_prefetch = 0 : i64, scratch_operands = 1 : i64, tpu.core_type = #tpu.core_type<tc>, window_params = [{transform_indices = @transform_0, window_bounds = array<i64: 2, 1024>}, {transform_indices = @transform_1, window_bounds = array<i64: 1, 1024>}]} {
    %c0_i32 = arith.constant 0 : i32
    %0 = arith.cmpi eq, %arg1, %c0_i32 : i32
    %1 = arith.extui %0 : i1 to i32
    %c0_i32_0 = arith.constant 0 : i32
    %2 = arith.cmpi ne, %1, %c0_i32_0 : i32
    scf.if %2 {
      %cst = arith.constant 0xFF800000 : f32
      %10 = vector.broadcast %cst : f32 to vector<2x1024xf32>
      %c0_8 = arith.constant 0 : index
      %c0_9 = arith.constant 0 : index
      %11 = vector.load %arg4[%c0_8, %c0_9] : memref<2x1024xf32, #tpu.memory_space<vmem>>, vector<2x1024xf32>
      tpu.vector_store %arg4[%c0_8, %c0_9], %10 {strides = array<i32>} : memref<2x1024xf32, #tpu.memory_space<vmem>>, vector<2x1024xf32>,
    } else {
    }
    %c0 = arith.constant 0 : index
    %c0_1 = arith.constant 0 : index
    %3 = vector.load %arg2[%c0, %c0_1] : memref<2x1024xf32, #tpu.memory_space<vmem>>, vector<2x1024xf32>
    %c0_2 = arith.constant 0 : index
    %c0_3 = arith.constant 0 : index
    %4 = vector.load %arg4[%c0_2, %c0_3] : memref<2x1024xf32, #tpu.memory_space<vmem>>, vector<2x1024xf32>
    %5 = arith.maximumf %4, %3 : vector<2x1024xf32>
    %c0_4 = arith.constant 0 : index
    %c0_5 = arith.constant 0 : index
    %6 = vector.load %arg4[%c0_4, %c0_5] : memref<2x1024xf32, #tpu.memory_space<vmem>>, vector<2x1024xf32>
    tpu.vector_store %arg4[%c0_4, %c0_5], %5 {strides = array<i32>} : memref<2x1024xf32, #tpu.memory_space<vmem>>, vector<2x1024xf32>,
    %c0_i32_6 = arith.constant 0 : i32
    %7 = arith.cmpi eq, %arg1, %c0_i32_6 : i32
    %8 = arith.extui %7 : i1 to i32
    %c0_i32_7 = arith.constant 0 : i32
    %9 = arith.cmpi ne, %8, %c0_i32_7 : i32
    scf.if %9 {
      %c0_8 = arith.constant 0 : index
      %c0_9 = arith.constant 0 : index
      %10 = vector.load %arg4[%c0_8, %c0_9] : memref<2x1024xf32, #tpu.memory_space<vmem>>, vector<2x1024xf32>
      %cst = arith.constant dense<0xFF800000> : vector<1024xf32>
      %11 = vector.multi_reduction <maximumf>, %10, %cst [0] : vector<2x1024xf32> to vector<1024xf32>
      %12 = vector.shape_cast %11 : vector<1024xf32> to vector<1x1024xf32>
      %c0_10 = arith.constant 0 : index
      %c0_11 = arith.constant 0 : index
      %13 = vector.load %arg3[%c0_10, %c0_11] : memref<1x1024xf32, #tpu.memory_space<vmem>>, vector<1x1024xf32>
      tpu.vector_store %arg3[%c0_10, %c0_11], %12 {strides = array<i32>} : memref<1x1024xf32, #tpu.memory_space<vmem>>, vector<1x1024xf32>,
    } else {
    }
    return
  }
  func.func @transform_0(%arg0: i32, %arg1: i32) -> (i32, i32) {
    %c0_i32 = arith.constant 0 : i32
    return %arg1, %arg0 : i32, i32
  }
  func.func @transform_1(%arg0: i32, %arg1: i32) -> (i32, i32) {
    %c0_i32 = arith.constant 0 : i32
    %c0_i32_0 = arith.constant 0 : i32
    return %c0_i32, %arg0 : i32, i32
  }
}

</mosaic_0001>

<bundles_post_ra>
// kernel: tpu_custom_call.1
= control target key start
LH: loop header
LB: loop body
LE: loop exit
PB: predicated region body
PF: predicated region fallthrough
CT: control target
= control target key end

     0   :  { %6 = vsyncpa [#allocation4], 0  ;;  %s323_s0 = inlined_call_operand.hbm [shape: f32[2,1024], index: 0, kind: input, shape index: {}]   ;;  %s324_s1 = inlined_call_operand.hbm [shape: f32[1,1024], index: 1, kind: output, shape index: {}]  }
   0x1   :  { %7 = vsyncpa [#allocation5], 0  ;;  %s269_s6 = smov [#allocation3]   ;;  %s221_s10 = scalar_lea.hbm %s323_s0, 256 }
   0x2   :  { %s14_s7 = sshll.u32 %s269_s6, 4  ;;  %p222_p0 = scmp.ne.s32.totalorder %s323_s0, %s221_s10  ;;  %s15_s7 = int_to_ptr.vmem [resolvable:$true] %s14_s7 }
   0x3   :  { %p225_p1 = scmp.lt.u32.totalorder %s221_s10, %s323_s0 }
   0x5   :  { %p227_p2 = pnand %p225_p1, %p222_p0 }
   0x7   :  { %230 = shalt.err (!%p227_p2)
}
   0x8   :  { %s231_s15 = scalar_lea.vmem %s15_s7, 256  ;;  %p236_p4 = scmp.lt.s32.totalorder %s15_s7, %s15_s7 }
   0x9   :  { %p232_p3 = scmp.ne.s32.totalorder %s15_s7, %s231_s15  ;;  %p237_p5 = scmp.lt.s32.totalorder %s231_s15, %s231_s15 }
   0xb   :  { %p238_p6 = por %p237_p5, %p236_p4 }
   0xd   :  { %p239_p7 = pnand %p238_p6, %p232_p3 }
   0xf   :  { %242 = shalt.err (!%p239_p7)
}
  0x10   :  { %17 = dma.hbm_to_vmem [thread:$0]  %s323_s0, 256, %s15_s7, [#allocation4]  }
  0x11   :  { %265 = dma.done.wait [#allocation4], 256  }
  0x12   :  { %266 = vsyncadd [#allocation4], 4294967040  ;;  %v46_v0 = vlaneseq  ;;  %v270_v1 = vmov 1983009808   ;;  %v271_v5 = vmov 1966171168  }
  0x13   :  { %v44_v2 = vunpack.c.l.s4 %v270_v1  ;;  %v154_v6 = vunpack.c.l.s4 %v271_v5  ;;  %v27_v8 = vld [vmem:[#allocation3] sm:$0xff]  ;;  %v28_v9 = vld [vmem:[#allocation3 + $0x8] sm:$0xff]  ;;  %vm84_vm0 = vcmask 1041408   ;;  %s272_s0 = smov [#allocation6]  }
  0x14   :  { %v47_v3 = vshrl.u32 %v46_v0, 7  ;;  %v42_v11 = vcombine.high %v27_v8, %v27_v8  ;;  %v59_v13 = vcombine.high %v28_v9, %v28_v9  ;;  %s206_s18 = sshll.u32 %s272_s0, 4  ;;  %s207_s18 = int_to_ptr.vmem [resolvable:$true] %s206_s18 }
  0x15   :  { %v45_v4 = vunpack.c.0.s8 %v44_v2  ;;  %v155_v10 = vunpack.c.0.s8 %v154_v6  ;;  %s243_s19 = scalar_lea.vmem %s207_s18, 128  ;;  %p248_p9 = scmp.lt.s32.totalorder %s207_s18, %s207_s18 }
  0x16   :  { %p244_p8 = scmp.ne.s32.totalorder %s207_s18, %s243_s19  ;;  %p249_p10 = scmp.lt.s32.totalorder %s243_s19, %s243_s19 }
  0x17   :  { %v48_v7 = vsub.s32 %v45_v4, %v47_v3  ;;  %v297_v21 = vsub.s32 %v155_v10, %v47_v3 }
  0x18   :  { %p250_p11 = por %p249_p10, %p248_p9 }
  0x19   :  { %v49_v12 = vrot.slane %v27_v8, %v48_v7  ;;  %v66_v14 = vrot.slane %v28_v9, %v48_v7  ;;  %v56_v15 = vrot.slane %v42_v11, %v48_v7  ;;  %v73_v17 = vrot.slane %v59_v13, %v48_v7 }
  0x1a   :  { %p251_p12 = pnand %p250_p11, %p244_p8 }
  0x1b   :  { %v57_v16 = vcombine.high %v49_v12, %v49_v12  ;;  %v74_v18 = vcombine.high %v66_v14, %v66_v14  ;;  %v85_v19 = vsel %vm84_vm0, %v49_v12, -inf  ;;  %v113_v20 = vsel %vm84_vm0, %v66_v14, -inf }
  0x1c   :  { %v58_v22 = vcombine.high %v56_v15, %v56_v15  ;;  %v75_v23 = vcombine.high %v73_v17, %v73_v17  ;;  %v86_v24 = vrot.slane %v85_v19, 4  ;;  %v99_v27 = vsel %vm84_vm0, %v56_v15, -inf }
  0x1d   :  { %v92_v25 = vsel %vm84_vm0, %v57_v16, -inf  ;;  %v114_v28 = vrot.slane %v113_v20, 4  ;;  %v120_v29 = vsel %vm84_vm0, %v74_v18, -inf  ;;  %v100_v31 = vrot.slane %v99_v27, 4 }
  0x1e   :  { %v93_v26 = vrot.slane %v92_v25, 4  ;;  %v87_v30 = vmax.f32 %v85_v19, %v86_v24  ;;  %v106_v32 = vsel %vm84_vm0, %v58_v22, -inf  ;;  %v121_v33 = vrot.slane %v120_v29, 4 }
  0x1f   :  { %v107_v35 = vrot.slane %v106_v32, 4  ;;  %v115_v36 = vmax.f32 %v113_v20, %v114_v28  ;;  %v127_v37 = vsel %vm84_vm0, %v73_v17, -inf  ;;  %v101_v39 = vmax.f32 %v99_v27, %v100_v31 }
  0x20   :  { %v94_v34 = vmax.f32 %v92_v25, %v93_v26  ;;  %v88_v38 = vrot.slane %v87_v30, 2  ;;  %v122_v40 = vmax.f32 %v120_v29, %v121_v33  ;;  %v128_v41 = vrot.slane %v127_v37, 4 }
  0x21   :  { %v108_v43 = vmax.f32 %v106_v32, %v107_v35  ;;  %v116_v44 = vrot.slane %v115_v36, 2  ;;  %v134_v45 = vsel %vm84_vm0, %v75_v23, -inf  ;;  %v102_v47 = vrot.slane %v101_v39, 2 }
  0x22   :  { %v95_v42 = vrot.slane %v94_v34, 2  ;;  %v89_v46 = vmax.f32 %v87_v30, %v88_v38  ;;  %v123_v48 = vrot.slane %v122_v40, 2  ;;  %v129_v49 = vmax.f32 %v127_v37, %v128_v41 }
  0x23   :  { %v109_v51 = vrot.slane %v108_v43, 2  ;;  %v117_v52 = vmax.f32 %v115_v36, %v116_v44  ;;  %v135_v53 = vrot.slane %v134_v45, 4  ;;  %v103_v55 = vmax.f32 %v101_v39, %v102_v47 }
  0x24   :  { %v96_v50 = vmax.f32 %v94_v34, %v95_v42  ;;  %v90_v54 = vrot.slane %v89_v46, 1  ;;  %v124_v56 = vmax.f32 %v122_v40, %v123_v48  ;;  %v130_v57 = vrot.slane %v129_v49, 2 }
  0x25   :  { %v110_v59 = vmax.f32 %v108_v43, %v109_v51  ;;  %v118_v60 = vrot.slane %v117_v52, 1  ;;  %v136_v61 = vmax.f32 %v134_v45, %v135_v53  ;;  %v104_v63 = vrot.slane %v103_v55, 1 }
  0x26   :  { %v97_v58 = vrot.slane %v96_v50, 1  ;;  %v91_v62 = vmax.f32 %v89_v46, %v90_v54  ;;  %v125_v0 = vrot.slane %v124_v56, 1  ;;  %v131_v1 = vmax.f32 %v129_v49, %v130_v57 }
  0x27   :  { %v111_v3 = vrot.slane %v110_v59, 1  ;;  %v119_v4 = vmax.f32 %v117_v52, %v118_v60  ;;  %v137_v5 = vrot.slane %v136_v61, 2  ;;  %v105_v6 = vmax.f32 %v103_v55, %v104_v63 }
  0x28   :  { %v98_v2 = vmax.f32 %v96_v50, %v97_v58  ;;  %v126_v7 = vmax.f32 %v124_v56, %v125_v0  ;;  %v132_v8 = vrot.slane %v131_v1, 1 }
  0x29   :  { %v112_v9 = vmax.f32 %v110_v59, %v111_v3  ;;  %v138_v10 = vmax.f32 %v136_v61, %v137_v5 }
  0x2a   :  { %v149_v11 = vcombine.low %v91_v62, %v98_v2  ;;  %v133_v12 = vmax.f32 %v131_v1, %v132_v8  ;;  %v151_v15 = vcombine.low %v119_v4, %v126_v7 }
  0x2b   :  { %v139_v13 = vrot.slane %v138_v10, 1  ;;  %v150_v14 = vcombine.low %v105_v6, %v112_v9 }
  0x2c   :  { %v159_v16 = vrot.slane %v149_v11, %v297_v21  ;;  %v173_v20 = vrot.slane %v151_v15, %v297_v21 }
  0x2d   :  { %v140_v17 = vmax.f32 %v138_v10, %v139_v13  ;;  %v166_v18 = vrot.slane %v150_v14, %v297_v21 }
  0x2f   :  { %v152_v19 = vcombine.low %v133_v12, %v140_v17  ;;  %v181_v22 = vcombine.low %v159_v16, %v166_v18 }
  0x31   :  { %v180_v23 = vrot.slane %v152_v19, %v297_v21  ;;  %v189_v25 = vrot.slane %v181_v22, %v297_v21 }
  0x33   :  { %v182_v24 = vcombine.low %v173_v20, %v180_v23 }
  0x35   :  { %v196_v26 = vrot.slane %v182_v24, %v297_v21 }
  0x37   :  { %v197_v27 = vcombine.low %v189_v25, %v196_v26 }
  0x39   :  { %199 = vst [vmem:[#allocation6] sm:$0xff] %v197_v27 }
  0x3a   :  { %254 = shalt.err (!%p251_p12)
}
  0x3b   :  { %s255_s22 = scalar_lea.hbm %s324_s1, 128 }
  0x3c   :  { %p256_p13 = scmp.ne.s32.totalorder %s324_s1, %s255_s22  ;;  %p259_p0 = scmp.lt.u32.totalorder %s255_s22, %s324_s1 }
  0x3e   :  { %p261_p1 = pnand %p259_p0, %p256_p13 }
  0x40   :  { %264 = shalt.err (!%p261_p1)
}
  0x41   :  { %209 = dma.vmem_to_hbm [thread:$0]  %s207_s18, 128, %s324_s1, [#allocation5]  }
  0x42   :  { %267 = dma.done.wait [#allocation5], 128  }
  0x43   :  { %268 = vsyncadd [#allocation5], 4294967168 }
  0x44   :  { %213 = vsyncpa [#allocation4], 1 }
  0x45   :  { %214 = vsyncpa [#allocation5], 1 }

</bundles_post_ra>
